<compile_context>
chip_gen: v6e
topology: v6e:2x2x1
jax: 0.10.0
libtpu: 0.0.40
codegen_flags: <defaults>
</compile_context>

<pallas_src>
import functools
import math

import jax
import jax.numpy as jnp
from jax import lax
from jax.experimental import pallas as pl
from jax.experimental.pallas import tpu as pltpu


def _is_v7x_like():
    """Best-effort detection of a dual-TensorCore / 3.2 TB/s-HBM (v7x) device."""
    try:
        kind = jax.devices()[0].device_kind.lower()
    except Exception:
        return False
    return ("v7" in kind) or ("7x" in kind)


def _mape_kernel(yp_ref, y_ref, o_ref, *, rows_valid, total_tiles, tile_rows,
                 chunk_rows, lanes, approx_recip, mask_needed, has_oob_tiles):
    # Zero this core's (1, 8, lanes) partial at the start of its sweep; the
    # output block stays VMEM-resident across the "arbitrary" axis and is
    # written back to HBM once at the end.
    @pl.when(pl.program_id(1) == 0)
    def _():
        o_ref[...] = jnp.zeros_like(o_ref)

    steps = pl.num_programs(1)
    tile_idx = pl.program_id(0) * steps + pl.program_id(1)
    tile_row0 = tile_idx * tile_rows
    n_chunks = tile_rows // chunk_rows

    def tile_partial(masked):
        def chunk_contrib(c):
            r0 = pl.multiple_of(c * chunk_rows, chunk_rows)
            yp = yp_ref[pl.ds(r0, chunk_rows), :].astype(jnp.float32)
            yt = y_ref[pl.ds(r0, chunk_rows), :].astype(jnp.float32)
            num = jnp.abs(yt - yp)
            den = yt
            if masked:
                # Row-granular tail mask applied BEFORE the divide so garbage
                # rows from the partial (out-of-bounds) DMA cannot give inf/NaN.
                row = lax.broadcasted_iota(jnp.int32, (chunk_rows, lanes), 0)
                valid = (tile_row0 + r0 + row) < rows_valid
                num = jnp.where(valid, num, 0.0)
                den = jnp.where(valid, den, 1.0)
            if approx_recip:
                # EUP reciprocal keeps the VALU slot free (v7x); ~2^-12 rel err.
                q = num * pl.reciprocal(den, approx=True)
            else:
                q = num / den
            # Sublane-only fold to a vreg-shaped partial (VPU only, no XLU).
            return q.reshape(chunk_rows // 8, 8, lanes).sum(axis=0)

        if n_chunks == 1:
            return chunk_contrib(0)
        return lax.fori_loop(
            0, n_chunks,
            lambda c, acc: acc + chunk_contrib(c),
            jnp.zeros((8, lanes), jnp.float32),
            unroll=min(8, n_chunks))

    if mask_needed or has_oob_tiles:
        unmasked_limit = total_tiles - 1 if mask_needed else total_tiles

        @pl.when(tile_idx < unmasked_limit)
        def _():
            o_ref[...] += tile_partial(False)[None]

        if mask_needed:
            @pl.when(tile_idx == total_tiles - 1)
            def _():
                o_ref[...] += tile_partial(True)[None]
        # Grid points with tile_idx >= total_tiles contribute nothing.
    else:
        o_ref[...] += tile_partial(False)[None]


def mape_loss(y_pred, y, *, tile_rows=None, lanes=128, num_parallel=None,
              approx_recip=None):
    """mean(|y - y_pred| / y) * 100, computed in a Pallas TPU kernel."""
    assert y_pred.shape == y.shape, (y_pred.shape, y.shape)
    n = y_pred.size
    assert n > 0

    itemsize = jnp.dtype(y_pred.dtype).itemsize
    sub = {4: 8, 2: 16, 1: 32}.get(itemsize, 8)   # native sublane multiple

    is_v7x = _is_v7x_like()
    if approx_recip is None:
        approx_recip = is_v7x        # exact divide elsewhere (bit-faithful)
    if num_parallel is None:
        num_parallel = 2 if is_v7x else 1

    rows_valid = -(-n // lanes)
    pad_elems = rows_valid * lanes - n

    # ~4 MiB of HBM traffic per input per grid step (8192 rows f32 / 16384 bf16).
    if tile_rows is None:
        tile_rows = (4 * 1024 * 1024) // (lanes * itemsize)
    tile_rows = min(tile_rows, rows_valid)
    tile_rows = sub * (-(-tile_rows // sub))          # dtype-native sublanes
    chunk_rows = min(64, tile_rows)                   # bounded vreg pressure
    if tile_rows % chunk_rows:
        tile_rows = chunk_rows * (-(-tile_rows // chunk_rows))

    total_tiles = -(-rows_valid // tile_rows)
    g = num_parallel if total_tiles >= 2 * num_parallel else 1
    steps = -(-total_tiles // g)
    has_oob_tiles = g * steps > total_tiles
    mask_needed = (rows_valid % tile_rows) != 0

    # Only pad to a 128-lane multiple when required for the 2-D reshape
    # (<=127 (1,1) pads, contributing exactly 0 to the sum).  The ragged row
    # tail is masked in-kernel instead of host-padded.
    yp_flat = y_pred.reshape(-1)
    y_flat = y.reshape(-1)
    if pad_elems:
        yp_flat = jnp.concatenate(
            [yp_flat, jnp.ones((pad_elems,), dtype=y_pred.dtype)])
        y_flat = jnp.concatenate(
            [y_flat, jnp.ones((pad_elems,), dtype=y.dtype)])
    yp2 = yp_flat.reshape(rows_valid, lanes)          # native dtype in HBM
    y2 = y_flat.reshape(rows_valid, lanes)

    if has_oob_tiles:
        def in_map(i, s):  # clamp so fully-OOB grid points DMA a valid tile
            return (jnp.minimum(i * steps + s, total_tiles - 1), 0)
    else:
        def in_map(i, s):
            return (i * steps + s, 0)

    kernel = functools.partial(
        _mape_kernel, rows_valid=rows_valid, total_tiles=total_tiles,
        tile_rows=tile_rows, chunk_rows=chunk_rows, lanes=lanes,
        approx_recip=approx_recip, mask_needed=mask_needed,
        has_oob_tiles=has_oob_tiles)

    # 2 inputs x 2 pipeline buffers x 4 MiB = 16 MiB by default; raise the
    # scoped limit past v5e's 16 MiB default so double buffering is kept.
    vmem_limit = int(max(32 * 1024 * 1024,
                         4 * tile_rows * lanes * itemsize + 2 * 1024 * 1024))

    partials = pl.pallas_call(
        kernel,
        out_shape=jax.ShapeDtypeStruct((g, 8, lanes), jnp.float32),
        grid_spec=pltpu.PrefetchScalarGridSpec(
            num_scalar_prefetch=0,
            grid=(g, steps),
            in_specs=[
                pl.BlockSpec((tile_rows, lanes), in_map),
                pl.BlockSpec((tile_rows, lanes), in_map),
            ],
            out_specs=pl.BlockSpec((1, 8, lanes), lambda i, s: (i, 0, 0)),
        ),
        compiler_params=pltpu.CompilerParams(
            dimension_semantics=("parallel", "arbitrary"),
            vmem_limit_bytes=vmem_limit,
        ),
        cost_estimate=pl.CostEstimate(
            flops=4 * n,
            transcendentals=(n if approx_recip else 0),
            bytes_accessed=int(yp2.nbytes) + int(y2.nbytes) + g * 8 * lanes * 4,
        ),
    )(yp2, y2)

    # Tiny final cross-lane / cross-core reduce (g*8*128 f32) in plain JAX.
    return partials.sum() / jnp.float32(n) * jnp.float32(100.0)


if __name__ == "__main__":
    key = jax.random.PRNGKey(0)
    k1, k2, k3, k4 = jax.random.split(key, 4)

    # Case 1: lane-aligned f32 input (2048 elements), exact divide.
    shape1 = (2, 4, 16, 16)
    y1 = jax.random.uniform(k1, shape1, jnp.float32, 0.5, 2.0)
    p1 = y1 + 0.1 * jax.random.normal(k2, shape1, jnp.float32)
    out1 = mape_loss(p1, y1, approx_recip=False)
    jax.block_until_ready(out1)
    ref1 = jnp.mean(jnp.abs(y1 - p1) / y1) * 100.0
    assert jnp.allclose(out1, ref1, rtol=1e-5, atol=1e-5), (out1, ref1)

    # Case 2: ragged size (1155 elements, not a multiple of 128) exercises the
    # lane pad + in-kernel row-tail masking; auto defaults (approx on v7x).
    shape2 = (3, 5, 7, 11)
    y2 = jax.random.uniform(k3, shape2, jnp.float32, 0.5, 2.0)
    p2 = y2 + 0.1 * jax.random.normal(k4, shape2, jnp.float32)
    out2 = mape_loss(p2, y2)
    jax.block_until_ready(out2)
    ref2 = jnp.mean(jnp.abs(y2 - p2) / y2) * 100.0
    assert jnp.allclose(out2, ref2, rtol=2e-3, atol=2e-3), (out2, ref2)

    # Case 3: bf16 inputs exercise dtype-scaled tiles / 16-sublane alignment.
    y3 = y1.astype(jnp.bfloat16)
    p3 = p1.astype(jnp.bfloat16)
    out3 = mape_loss(p3, y3, approx_recip=False)
    jax.block_until_ready(out3)
    y3f = y3.astype(jnp.float32)
    p3f = p3.astype(jnp.float32)
    ref3 = jnp.mean(jnp.abs(y3f - p3f) / y3f) * 100.0
    assert jnp.allclose(out3, ref3, rtol=1e-4, atol=1e-4), (out3, ref3)

    print("KERNEL_OK")
</pallas_src>

<mosaic_0001>
module attributes {stable_mosaic.version = 11 : i64} {
  func.func @_mape_kernel(%arg0: i32, %arg1: i32, %arg2: memref<16x128xf32, #tpu.memory_space<vmem>>, %arg3: memref<16x128xf32, #tpu.memory_space<vmem>>, %arg4: memref<1x8x128xf32, #tpu.memory_space<vmem>>) attributes {dimension_semantics = [#tpu.dimension_semantics<parallel>, #tpu.dimension_semantics<arbitrary>], iteration_bounds = array<i64: 1, 1>, scalar_prefetch = 0 : i64, scratch_operands = 0 : i64, tpu.core_type = #tpu.core_type<tc>, window_params = [{transform_indices = @transform_0, window_bounds = array<i64: 16, 128>}, {transform_indices = @transform_1, window_bounds = array<i64: 16, 128>}, {transform_indices = @transform_2, window_bounds = array<i64: 1, 8, 128>}]} {
    %c0_i32 = arith.constant 0 : i32
    %0 = arith.cmpi eq, %arg1, %c0_i32 : i32
    %1 = arith.extui %0 : i1 to i32
    %c0_i32_0 = arith.constant 0 : i32
    %2 = arith.cmpi ne, %1, %c0_i32_0 : i32
    scf.if %2 {
      %cst_9 = arith.constant 0.000000e+00 : f32
      %17 = vector.broadcast %cst_9 : f32 to vector<1x8x128xf32>
      %c0_10 = arith.constant 0 : index
      %c0_11 = arith.constant 0 : index
      %c0_12 = arith.constant 0 : index
      %18 = vector.load %arg4[%c0_10, %c0_11, %c0_12] : memref<1x8x128xf32, #tpu.memory_space<vmem>>, vector<1x8x128xf32>
      tpu.vector_store %arg4[%c0_10, %c0_11, %c0_12], %17 {strides = array<i32>} : memref<1x8x128xf32, #tpu.memory_space<vmem>>, vector<1x8x128xf32>,
    } else {
    }
    %c0 = arith.constant 0 : index
    %c0_1 = arith.constant 0 : index
    %c0_2 = arith.constant 0 : index
    %3 = vector.load %arg4[%c0, %c0_1, %c0_2] : memref<1x8x128xf32, #tpu.memory_space<vmem>>, vector<1x8x128xf32>
    %c0_i32_3 = arith.constant 0 : i32
    %4 = tpu.assume_multiple %c0_i32_3, 16 : i32
    %5 = arith.index_cast %4 : i32 to index
    %c0_4 = arith.constant 0 : index
    %6 = vector.load %arg2[%5, %c0_4] : memref<16x128xf32, #tpu.memory_space<vmem>>, vector<16x128xf32>
    %7 = arith.index_cast %4 : i32 to index
    %c0_5 = arith.constant 0 : index
    %8 = vector.load %arg3[%7, %c0_5] : memref<16x128xf32, #tpu.memory_space<vmem>>, vector<16x128xf32>
    %9 = arith.subf %8, %6 : vector<16x128xf32>
    %10 = math.absf %9 : vector<16x128xf32>
    %11 = arith.divf %10, %8 : vector<16x128xf32>
    %12 = vector.shape_cast %11 : vector<16x128xf32> to vector<2x8x128xf32>
    %cst = arith.constant dense<0.000000e+00> : vector<8x128xf32>
    %13 = vector.multi_reduction <add>, %12, %cst [0] : vector<2x8x128xf32> to vector<8x128xf32>
    %14 = vector.shape_cast %13 : vector<8x128xf32> to vector<1x8x128xf32>
    %15 = arith.addf %3, %14 : vector<1x8x128xf32>
    %c0_6 = arith.constant 0 : index
    %c0_7 = arith.constant 0 : index
    %c0_8 = arith.constant 0 : index
    %16 = vector.load %arg4[%c0_6, %c0_7, %c0_8] : memref<1x8x128xf32, #tpu.memory_space<vmem>>, vector<1x8x128xf32>
    tpu.vector_store %arg4[%c0_6, %c0_7, %c0_8], %15 {strides = array<i32>} : memref<1x8x128xf32, #tpu.memory_space<vmem>>, vector<1x8x128xf32>,
    return
  }
  func.func @transform_0(%arg0: i32, %arg1: i32) -> (i32, i32) {
    %c1_i32 = arith.constant 1 : i32
    %0 = arith.muli %arg0, %c1_i32 : i32
    %1 = arith.addi %0, %arg1 : i32
    %c0_i32 = arith.constant 0 : i32
    %c0_i32_0 = arith.constant 0 : i32
    return %1, %c0_i32 : i32, i32
  }
  func.func @transform_1(%arg0: i32, %arg1: i32) -> (i32, i32) {
    %c1_i32 = arith.constant 1 : i32
    %0 = arith.muli %arg0, %c1_i32 : i32
    %1 = arith.addi %0, %arg1 : i32
    %c0_i32 = arith.constant 0 : i32
    %c0_i32_0 = arith.constant 0 : i32
    return %1, %c0_i32 : i32, i32
  }
  func.func @transform_2(%arg0: i32, %arg1: i32) -> (i32, i32, i32) {
    %c0_i32 = arith.constant 0 : i32
    %c0_i32_0 = arith.constant 0 : i32
    %c0_i32_1 = arith.constant 0 : i32
    return %arg0, %c0_i32, %c0_i32_0 : i32, i32, i32
  }
}

</mosaic_0001>

<bundles_post_ra>
// kernel: tpu_custom_call.1
= control target key start
LH: loop header
LB: loop body
LE: loop exit
PB: predicated region body
PF: predicated region fallthrough
CT: control target
= control target key end

     0   :  { %7 = vsyncpa [#allocation3], 0  ;;  %s194_s0 = inlined_call_operand.hbm [shape: f32[16,128], index: 0, kind: input, shape index: {}]   ;;  %s195_s1 = inlined_call_operand.hbm [shape: f32[16,128], index: 1, kind: input, shape index: {}]   ;;  %s196_s2 = inlined_call_operand.hbm [shape: f32[1,8,128], index: 2, kind: output, shape index: {}]  }
   0x1   :  { %8 = vsyncpa [#allocation6], 0 }
   0x2   :  { %9 = vsyncpa [#allocation4], 0  ;;  %s165_s9 = smov [#allocation2]  }
   0x3   :  { %s19_s10 = sshll.u32 %s165_s9, 4  ;;  %s20_s10 = int_to_ptr.vmem [resolvable:$true] %s19_s10 }
   0x4   :  { %s107_s11 = scalar_lea.vmem %s20_s10, 256  ;;  %p112_p1 = scmp.lt.s32.totalorder %s20_s10, %s20_s10 }
   0x5   :  { %p108_p0 = scmp.ne.s32.totalorder %s20_s10, %s107_s11  ;;  %p113_p2 = scmp.lt.s32.totalorder %s107_s11, %s107_s11 }
   0x7   :  { %p114_p3 = por %p113_p2, %p112_p1 }
   0x9   :  { %p115_p4 = pnand %p114_p3, %p108_p0 }
   0xb   :  { %118 = shalt.err (!%p115_p4)
}
   0xc   :  { %s166_s12 = smov 128   ;;  %s167_s13 = smov 8  }
   0xd   :  { %25 = dma.hbm_to_vmem [thread:$0]  %s194_s0, 256, %s20_s10, [#allocation3], %s166_s12, %s166_s12, %s167_s13  }
   0xe   :  { %s168_s16 = smov [#allocation5]  }
   0xf   :  { %s35_s17 = sshll.u32 %s168_s16, 4  ;;  %s36_s17 = int_to_ptr.vmem [resolvable:$true] %s35_s17 }
  0x10   :  { %s127_s18 = scalar_lea.vmem %s36_s17, 256  ;;  %p132_p6 = scmp.lt.s32.totalorder %s36_s17, %s36_s17 }
  0x11   :  { %p128_p5 = scmp.ne.s32.totalorder %s36_s17, %s127_s18  ;;  %p133_p7 = scmp.lt.s32.totalorder %s127_s18, %s127_s18 }
  0x13   :  { %p134_p8 = por %p133_p7, %p132_p6 }
  0x15   :  { %p135_p9 = pnand %p134_p8, %p128_p5 }
  0x17   :  { %138 = shalt.err (!%p135_p9)
}
  0x18   :  { %41 = dma.hbm_to_vmem [thread:$0]  %s195_s1, 256, %s36_s17, [#allocation6], %s166_s12, %s166_s12, %s167_s13  }
  0x19   :  { %159 = dma.done.wait [#allocation3], 256  }
  0x1a   :  { %160 = vsyncadd [#allocation3], 4294967040 }
  0x1b   :  { %161 = dma.done.wait [#allocation6], 256  }
  0x1c   :  { %162 = vsyncadd [#allocation6], 4294967040  ;;  %v60_v0 = vld [vmem:[#allocation5] sm:$0xff]  ;;  %v61_v1 = vld [vmem:[#allocation5 + $0x8] sm:$0xff]  ;;  %s169_s0 = smov [#allocation7]  }
  0x1d   :  { %95 = vrcp.f32 %v60_v0  ;;  %v58_v2 = vld [vmem:[#allocation2] sm:$0xff]  ;;  %v59_v3 = vld [vmem:[#allocation2 + $0x8] sm:$0xff]  ;;  %s79_s1 = sshll.u32 %s169_s0, 4  ;;  %s80_s1 = int_to_ptr.vmem [resolvable:$true] %s79_s1 }
  0x1e   :  { %97 = vrcp.f32 %v61_v1  ;;  %v62_v4 = vsub.f32 %v60_v0, %v58_v2  ;;  %v63_v5 = vsub.f32 %v61_v1, %v59_v3  ;;  %s139_s21 = scalar_lea.vmem %s80_s1, 128  ;;  %p144_p11 = scmp.lt.s32.totalorder %s80_s1, %s80_s1 }
  0x1f   :  { %p140_p10 = scmp.ne.s32.totalorder %s80_s1, %s139_s21  ;;  %p145_p12 = scmp.lt.s32.totalorder %s139_s21, %s139_s21 }
  0x20   :  { %v64_v6 = vand.u32 2147483647, %v62_v4  ;;  %v65_v7 = vand.u32 2147483647, %v63_v5 }
  0x21   :  { %p146_p13 = por %p145_p12, %p144_p11 }
  0x23   :  { %p147_p0 = pnand %p146_p13, %p140_p10 }
  0x2a   :  { %v96_v8 = vpop.eup %95 }
  0x2b   :  { %v98_v9 = vpop.eup %97  ;;  %v67_v10 = vmul.f32 %v96_v8, %v64_v6 }
  0x2c   :  { %v69_v11 = vmul.f32 %v98_v9, %v65_v7 }
  0x2e   :  { %v70_v12 = vadd.f32 %v69_v11, %v67_v10 }
  0x30   :  { %72 = vst [vmem:[#allocation7] sm:$0xff] %v70_v12 }
  0x31   :  { %150 = shalt.err (!%p147_p0)
}
  0x32   :  { %82 = dma.vmem_to_hbm [thread:$0]  %s80_s1, 128, %s196_s2, [#allocation4]  }
  0x33   :  { %163 = dma.done.wait [#allocation4], 128  }
  0x34   :  { %164 = vsyncadd [#allocation4], 4294967168 }
  0x35   :  { %86 = vsyncpa [#allocation3], 1 }
  0x36   :  { %87 = vsyncpa [#allocation6], 1 }
  0x37   :  { %88 = vsyncpa [#allocation4], 1 }

</bundles_post_ra>
